<compile_context>
chip_gen: v7x
topology: tpu7x:2x2x1
jax: 0.10.0
libtpu: 0.0.40
codegen_flags: <defaults>
</compile_context>

<pallas_src>
import functools
import numpy as np
import jax
import jax.numpy as jnp
from jax import lax
from jax.experimental import pallas as pl
from jax.experimental.pallas import tpu as pltpu


def get_sinusoid_encoding(position_size, hidden_size):
    pos = np.arange(position_size)[:, None].astype(np.float64)
    hid = np.arange(hidden_size)[None, :]
    angle = pos / np.power(10000.0, 2 * (hid // 2) / hidden_size)
    enc = np.array(angle)
    enc[:, 0::2] = np.sin(enc[:, 0::2])
    enc[:, 1::2] = np.cos(enc[:, 1::2])
    return enc.astype(np.float32)


# ----------------------------------------------------------------------------
# Shared in-kernel tail: segment select + fused scale/add + LayerNorm + store.
# ----------------------------------------------------------------------------
def _seg_select(sids, seg_ref, ts, hidden):
    """Segment embedding via VPU compare+select (nseg is tiny & static)."""
    x_seg = jnp.broadcast_to(seg_ref[0:1, :].astype(jnp.float32), (ts, hidden))
    for s in range(1, seg_ref.shape[0]):                 # static unroll (nseg=2)
        row = jnp.broadcast_to(seg_ref[s:s + 1, :].astype(jnp.float32),
                               (ts, hidden))
        x_seg = jnp.where(sids == s, row, x_seg)
    return x_seg


def _combine_and_layernorm(x_word, sids, seg_ref, pos_slab,
                           gamma_ref, beta_ref, out_ref, emb_scale, eps):
    ts, hidden = out_ref.shape
    x_seg = _seg_select(sids, seg_ref, ts, hidden)
    # Fused scale: scale * (word + seg) + pos   (one vmul instead of two).
    x = emb_scale * (x_word + x_seg) + pos_slab
    mean = jnp.mean(x, axis=-1, keepdims=True)
    cent = x - mean
    var = jnp.mean(cent * cent, axis=-1, keepdims=True)
    y = cent * lax.rsqrt(var + eps)
    out_ref[...] = (y * gamma_ref[...] + beta_ref[...]).astype(out_ref.dtype)


# ----------------------------------------------------------------------------
# Path A: small vocab -> word table VMEM-resident, gather as one-hot matmul.
# ----------------------------------------------------------------------------
def _emb_kernel_resident(iid_ref, sid_ref,              # (TS, 1) int32 ids
                         word_ref, seg_ref, pos_ref,    # VMEM-resident tables
                         gamma_ref, beta_ref,           # LayerNorm params (1, H)
                         out_ref,                       # (TS, H) output slab
                         *, emb_scale, eps):
    ts, hidden = out_ref.shape
    vocab = word_ref.shape[0]

    ids = iid_ref[...]                                  # (TS, 1) int32
    sids = sid_ref[...]                                 # (TS, 1) int32

    # Gather-as-matmul: one-hot (TS, V) @ table (V, H) on the MXU.
    # HIGHEST precision keeps the gathered f32 rows bit-exact.
    word_oh = (ids == lax.broadcasted_iota(jnp.int32, (ts, vocab), 1)
               ).astype(jnp.float32)
    x_word = jnp.dot(word_oh, word_ref[...].astype(jnp.float32),
                     precision=lax.Precision.HIGHEST,
                     preferred_element_type=jnp.float32)

    # Position rows: slice the resident table (never re-streamed per batch).
    j = pl.program_id(1)
    start = pl.multiple_of(j * ts, ts)
    pos_slab = pos_ref[pl.ds(start, ts), :].astype(jnp.float32)

    _combine_and_layernorm(x_word, sids, seg_ref, pos_slab,
                           gamma_ref, beta_ref, out_ref, emb_scale, eps)


# ----------------------------------------------------------------------------
# Path B: large vocab -> word table stays in HBM, DMA row-gather with an
# N-deep in-flight window, token ids scalar-prefetched into SMEM.
# ----------------------------------------------------------------------------
def _emb_kernel_hbm(iid_smem,                           # (n_tok,) int32, SMEM
                    sid_ref,                            # (TS, 1) int32
                    word_hbm,                           # (vocab, H) in HBM
                    seg_ref, pos_ref, gamma_ref, beta_ref,
                    out_ref,                            # (TS, H)
                    gbuf, sem,                          # scratch: gather buf, DMA sems
                    *, emb_scale, eps, nbuf):
    ts, hidden = out_ref.shape
    b = pl.program_id(0)
    j = pl.program_id(1)
    n_st = pl.num_programs(1)
    base = (b * n_st + j) * ts                          # flat token offset

    def start_row(t, slot):
        idx = iid_smem[base + t]
        pltpu.make_async_copy(word_hbm.at[pl.ds(idx, 1), :],
                              gbuf.at[pl.ds(t, 1), :],
                              sem.at[slot]).start()

    nb = min(nbuf, ts)
    for k in range(nb):                                 # static prologue
        start_row(k, k)

    def body(t, carry):
        slot = t % nb
        # Wait for row t; all rows are identical size so a row-0 descriptor
        # carries the right byte count for the semaphore wait.
        pltpu.make_async_copy(word_hbm.at[pl.ds(0, 1), :],
                              gbuf.at[pl.ds(0, 1), :],
                              sem.at[slot]).wait()

        @pl.when(t + nb < ts)
        def _():
            start_row(t + nb, slot)                     # reuse the freed slot
        return carry

    lax.fori_loop(0, ts, body, 0)
    # TODO(synk): overlap the tail of this gather with the previous tile's
    # LayerNorm via a hand-rolled cross-step pipeline (P4) if DMA is exposed.

    x_word = gbuf[...].astype(jnp.float32)
    sids = sid_ref[...]
    start = pl.multiple_of(j * ts, ts)
    pos_slab = pos_ref[pl.ds(start, ts), :].astype(jnp.float32)

    _combine_and_layernorm(x_word, sids, seg_ref, pos_slab,
                           gamma_ref, beta_ref, out_ref, emb_scale, eps)


# ----------------------------------------------------------------------------
# Wrapper
# ----------------------------------------------------------------------------
def transformer_embeddings(input_ids, segment_ids,
                           word_table, seg_table, pos_table,
                           gamma, beta, eps=1e-5, seq_tile=1024,
                           use_hbm_gather=None, out_dtype=jnp.float32):
    B, S = input_ids.shape
    vocab, H = word_table.shape
    nseg = seg_table.shape[0]
    position_size = pos_table.shape[0]
    assert S <= position_size, "sequence longer than position table"

    # Token tile = one full sequence row, capped at `seq_tile` tokens.
    TS = S if S <= seq_tile else seq_tile
    assert S % TS == 0 and (TS % 8 == 0 or TS == S), "seq tile must align"
    n_st = S // TS
    n_tok = B * S

    word_bytes = int(vocab) * int(H) * word_table.dtype.itemsize
    if use_hbm_gather is None:
        # Resident one-hot branch only survives small tables; big vocab must
        # stay in HBM (v7x has 64 MiB VMEM total).
        use_hbm_gather = word_bytes > (16 << 20)

    sid2 = segment_ids.reshape(n_tok, 1).astype(jnp.int32)
    gamma2 = gamma.reshape(1, H).astype(jnp.float32)
    beta2 = beta.reshape(1, H).astype(jnp.float32)
    emb_scale = float(H) ** 0.5

    # Constant-index operands are fetched exactly once -> single-buffer them.
    resident = functools.partial(pl.BlockSpec, pipeline_mode=pl.Buffered(1))

    if not use_hbm_gather:
        # ---------------- resident one-hot path ----------------
        iid2 = input_ids.reshape(n_tok, 1).astype(jnp.int32)
        kernel = functools.partial(_emb_kernel_resident,
                                   emb_scale=emb_scale, eps=float(eps))
        tok_block = lambda b, j: (b * n_st + j, 0)
        const_block = lambda b, j: (0, 0)
        in_specs = [
            pl.BlockSpec((TS, 1), tok_block),                 # input ids
            pl.BlockSpec((TS, 1), tok_block),                 # segment ids
            resident((vocab, H), const_block),                # word table
            resident((nseg, H), const_block),                 # segment table
            resident((position_size, H), const_block),        # position table
            resident((1, H), const_block),                    # gamma
            resident((1, H), const_block),                    # beta
        ]
        out_spec = pl.BlockSpec((TS, H), tok_block)

        need = (word_bytes + (nseg + position_size + 2) * H * 4
                + 2 * 2 * TS * 4                 # ids, double-buffered
                + 2 * TS * H * 4                 # output, double-buffered
                + TS * vocab * 4                 # one-hot temporary
                + 6 * TS * H * 4)                # misc f32 temporaries
        vmem_limit = int(min(128 << 20,
                             max(32 << 20, int(need * 1.5) + (4 << 20))))
        cost = pl.CostEstimate(
            flops=2 * n_tok * vocab * H + 10 * n_tok * H,
            transcendentals=n_tok,
            bytes_accessed=4 * (n_tok * H + vocab * H + nseg * H
                                + position_size * H + 2 * H + 2 * n_tok))

        out_flat = pl.pallas_call(
            kernel,
            out_shape=jax.ShapeDtypeStruct((n_tok, H), out_dtype),
            grid_spec=pltpu.PrefetchScalarGridSpec(
                num_scalar_prefetch=0,
                grid=(B, n_st),
                in_specs=in_specs,
                out_specs=out_spec),
            compiler_params=pltpu.CompilerParams(
                dimension_semantics=("parallel", "parallel"),
                vmem_limit_bytes=vmem_limit),
            cost_estimate=cost,
        )(iid2, sid2, word_table, seg_table, pos_table, gamma2, beta2)
    else:
        # ---------------- HBM DMA-gather path ----------------
        nbuf = min(8, TS)                                 # in-flight DMA window
        kernel = functools.partial(_emb_kernel_hbm, emb_scale=emb_scale,
                                   eps=float(eps), nbuf=nbuf)
        iid_flat = input_ids.reshape(n_tok).astype(jnp.int32)   # -> SMEM
        tok_block = lambda b, j, iid: (b * n_st + j, 0)
        const_block = lambda b, j, iid: (0, 0)
        in_specs = [
            pl.BlockSpec((TS, 1), tok_block),                 # segment ids
            pl.BlockSpec(memory_space=pl.ANY),                # word table (HBM)
            resident((nseg, H), const_block),
            resident((position_size, H), const_block),
            resident((1, H), const_block),
            resident((1, H), const_block),
        ]
        out_spec = pl.BlockSpec((TS, H), tok_block)
        scratch = [pltpu.VMEM((TS, H), word_table.dtype),     # gather buffer
                   pltpu.SemaphoreType.DMA((nbuf,))]

        need = ((nseg + position_size + 2) * H * 4
                + 2 * TS * 4 * 2
                + 2 * TS * H * 4
                + TS * H * word_table.dtype.itemsize
                + 6 * TS * H * 4)
        vmem_limit = int(min(128 << 20,
                             max(32 << 20, int(need * 1.5) + (4 << 20))))
        cost = pl.CostEstimate(
            flops=12 * n_tok * H,
            transcendentals=n_tok,
            bytes_accessed=(4 * n_tok * H
                            + n_tok * H * word_table.dtype.itemsize
                            + 4 * (nseg * H + position_size * H + 2 * H)
                            + 8 * n_tok))

        out_flat = pl.pallas_call(
            kernel,
            out_shape=jax.ShapeDtypeStruct((n_tok, H), out_dtype),
            grid_spec=pltpu.PrefetchScalarGridSpec(
                num_scalar_prefetch=1,
                grid=(B, n_st),
                in_specs=in_specs,
                out_specs=out_spec,
                scratch_shapes=scratch),
            compiler_params=pltpu.CompilerParams(
                dimension_semantics=("parallel", "parallel"),
                vmem_limit_bytes=vmem_limit),
            cost_estimate=cost,
        )(iid_flat, sid2, word_table, seg_table, pos_table, gamma2, beta2)

    return out_flat.reshape(B, S, H)


# ----------------------------------------------------------------------------
# Pure-JAX reference (matches the PyTorch module in eval mode).
# ----------------------------------------------------------------------------
def _reference(input_ids, segment_ids, word_table, seg_table, pos_table,
               gamma, beta, eps=1e-5):
    B, S = input_ids.shape
    H = word_table.shape[1]
    scale = float(H) ** 0.5
    pos_ids = jnp.broadcast_to(jnp.arange(S), (B, S))
    x = (scale * word_table[input_ids]
         + scale * seg_table[segment_ids]
         + pos_table[pos_ids])
    mean = jnp.mean(x, axis=-1, keepdims=True)
    var = jnp.mean((x - mean) ** 2, axis=-1, keepdims=True)
    return (x - mean) * lax.rsqrt(var + eps) * gamma + beta


if __name__ == "__main__":
    # Small, module-consistent shapes.
    vocab_size = 50
    hidden_size = 32
    position_size = 64
    segment_size = 2

    key = jax.random.PRNGKey(0)
    k_word, k_seg = jax.random.split(key, 2)

    std = hidden_size ** (-0.5)
    word_table = std * jax.random.normal(k_word, (vocab_size, hidden_size),
                                         dtype=jnp.float32)
    word_table = word_table.at[0].set(0.0)   # nn.Embedding padding_idx=0
    seg_table = std * jax.random.normal(k_seg, (segment_size, hidden_size),
                                        dtype=jnp.float32)
    pos_table = jnp.asarray(get_sinusoid_encoding(position_size, hidden_size))
    gamma = jnp.ones((hidden_size,), jnp.float32)
    beta = jnp.zeros((hidden_size,), jnp.float32)

    def check(B, S, use_hbm_gather, seq_tile):
        kk = jax.random.fold_in(key, B * 1000 + S + int(use_hbm_gather))
        k_iid, k_sid = jax.random.split(kk, 2)
        input_ids = jax.random.randint(k_iid, (B, S), 0, vocab_size,
                                       dtype=jnp.int32)
        segment_ids = jax.random.randint(k_sid, (B, S), 0, segment_size,
                                         dtype=jnp.int32)
        out = transformer_embeddings(input_ids, segment_ids,
                                     word_table, seg_table, pos_table,
                                     gamma, beta, seq_tile=seq_tile,
                                     use_hbm_gather=use_hbm_gather)
        out = jax.block_until_ready(out)
        ref = _reference(input_ids, segment_ids, word_table, seg_table,
                         pos_table, gamma, beta)
        np.testing.assert_allclose(np.asarray(out), np.asarray(ref),
                                   rtol=1e-5, atol=1e-5)

    check(2, 8, False, 1024)    # resident (one-hot MXU gather) path
    check(2, 16, False, 8)      # multi-tile sequence: in-kernel pos slicing
    check(2, 8, True, 1024)     # HBM scalar-prefetch DMA-gather path
    print("KERNEL_OK")
</pallas_src>

<mosaic_0001>
module attributes {stable_mosaic.version = 11 : i64} {
  func.func @_emb_kernel_resident(%arg0: i32, %arg1: i32, %arg2: memref<8x1xi32, #tpu.memory_space<vmem>>, %arg3: memref<8x1xi32, #tpu.memory_space<vmem>>, %arg4: memref<50x32xf32, #tpu.memory_space<vmem>>, %arg5: memref<2x32xf32, #tpu.memory_space<vmem>>, %arg6: memref<64x32xf32, #tpu.memory_space<vmem>>, %arg7: memref<1x32xf32, #tpu.memory_space<vmem>>, %arg8: memref<1x32xf32, #tpu.memory_space<vmem>>, %arg9: memref<8x32xf32, #tpu.memory_space<vmem>>) attributes {dimension_semantics = [#tpu.dimension_semantics<parallel>, #tpu.dimension_semantics<parallel>], iteration_bounds = array<i64: 2, 1>, scalar_prefetch = 0 : i64, scratch_operands = 0 : i64, tpu.core_type = #tpu.core_type<tc>, window_params = [{transform_indices = @transform_0, window_bounds = array<i64: 8, 1>}, {transform_indices = @transform_1, window_bounds = array<i64: 8, 1>}, {pipeline_mode = #tpu.pipeline_mode<synchronous>, transform_indices = @transform_2, window_bounds = array<i64: 50, 32>}, {pipeline_mode = #tpu.pipeline_mode<synchronous>, transform_indices = @transform_3, window_bounds = array<i64: 2, 32>}, {pipeline_mode = #tpu.pipeline_mode<synchronous>, transform_indices = @transform_4, window_bounds = array<i64: 64, 32>}, {pipeline_mode = #tpu.pipeline_mode<synchronous>, transform_indices = @transform_5, window_bounds = array<i64: 1, 32>}, {pipeline_mode = #tpu.pipeline_mode<synchronous>, transform_indices = @transform_6, window_bounds = array<i64: 1, 32>}, {transform_indices = @transform_7, window_bounds = array<i64: 8, 32>}]} {
    %c0 = arith.constant 0 : index
    %c0_0 = arith.constant 0 : index
    %0 = vector.load %arg2[%c0, %c0_0] : memref<8x1xi32, #tpu.memory_space<vmem>>, vector<8x1xi32>
    %c0_1 = arith.constant 0 : index
    %c0_2 = arith.constant 0 : index
    %1 = vector.load %arg3[%c0_1, %c0_2] : memref<8x1xi32, #tpu.memory_space<vmem>>, vector<8x1xi32>
    %2 = tpu.iota {dimensions = array<i32: 1>} : vector<8x50xi32>
    %3 = vector.broadcast %0 : vector<8x1xi32> to vector<8x50xi32>
    %4 = arith.cmpi eq, %3, %2 : vector<8x50xi32>
    %5 = arith.extui %4 : vector<8x50xi1> to vector<8x50xi32>
    %6 = arith.sitofp %5 : vector<8x50xi32> to vector<8x50xf32>
    %c0_3 = arith.constant 0 : index
    %c0_4 = arith.constant 0 : index
    %7 = vector.load %arg4[%c0_3, %c0_4] : memref<50x32xf32, #tpu.memory_space<vmem>>, vector<50x32xf32>
    %cst = arith.constant dense<0.000000e+00> : vector<8x32xf32>
    %8 = tpu.matmul %6, %7, %cst {dimension_numbers = #tpu.dot_dimension_numbers<[1], [0], [0], [1], [0, 0, 1, 1], [], []>, precision = #tpu.contract_precision<fp32>} : vector<8x50xf32>, vector<50x32xf32>, vector<8x32xf32> -> vector<8x32xf32>
    %c8_i32 = arith.constant 8 : i32
    %9 = arith.muli %arg1, %c8_i32 : i32
    %10 = tpu.assume_multiple %9, 8 : i32
    %11 = arith.index_cast %10 : i32 to index
    %c0_5 = arith.constant 0 : index
    %12 = vector.load %arg6[%11, %c0_5] : memref<64x32xf32, #tpu.memory_space<vmem>>, vector<8x32xf32>
    %c0_6 = arith.constant 0 : index
    %c0_7 = arith.constant 0 : index
    %13 = vector.load %arg5[%c0_6, %c0_7] : memref<2x32xf32, #tpu.memory_space<vmem>>, vector<1x32xf32>
    %14 = vector.shape_cast %13 : vector<1x32xf32> to vector<1x32xf32>
    %15 = vector.broadcast %14 : vector<1x32xf32> to vector<8x32xf32>
    %c1 = arith.constant 1 : index
    %c0_8 = arith.constant 0 : index
    %16 = vector.load %arg5[%c1, %c0_8] : memref<2x32xf32, #tpu.memory_space<vmem>>, vector<1x32xf32>
    %17 = vector.shape_cast %16 : vector<1x32xf32> to vector<1x32xf32>
    %18 = vector.broadcast %17 : vector<1x32xf32> to vector<8x32xf32>
    %c1_i32 = arith.constant 1 : i32
    %19 = vector.broadcast %c1_i32 : i32 to vector<8x1xi32>
    %20 = arith.cmpi eq, %1, %19 : vector<8x1xi32>
    %21 = vector.shape_cast %20 : vector<8x1xi1> to vector<8x1xi1>
    %22 = vector.broadcast %21 : vector<8x1xi1> to vector<8x32xi1>
    %23 = arith.select %22, %18, %15 : vector<8x32xi1>, vector<8x32xf32>
    %24 = arith.addf %8, %23 : vector<8x32xf32>
    %cst_9 = arith.constant 5.65685415 : f32
    %25 = vector.broadcast %cst_9 : f32 to vector<8x32xf32>
    %26 = arith.mulf %25, %24 : vector<8x32xf32>
    %27 = arith.addf %26, %12 : vector<8x32xf32>
    %cst_10 = arith.constant dense<0.000000e+00> : vector<8xf32>
    %28 = vector.multi_reduction <add>, %27, %cst_10 [1] : vector<8x32xf32> to vector<8xf32>
    %29 = vector.shape_cast %28 : vector<8xf32> to vector<8x1xf32>
    %cst_11 = arith.constant 3.200000e+01 : f32
    %30 = vector.broadcast %cst_11 : f32 to vector<8x1xf32>
    %31 = arith.divf %29, %30 : vector<8x1xf32>
    %32 = vector.broadcast %31 : vector<8x1xf32> to vector<8x32xf32>
    %33 = arith.subf %27, %32 : vector<8x32xf32>
    %34 = arith.mulf %33, %33 : vector<8x32xf32>
    %cst_12 = arith.constant dense<0.000000e+00> : vector<8xf32>
    %35 = vector.multi_reduction <add>, %34, %cst_12 [1] : vector<8x32xf32> to vector<8xf32>
    %36 = vector.shape_cast %35 : vector<8xf32> to vector<8x1xf32>
    %cst_13 = arith.constant 3.200000e+01 : f32
    %37 = vector.broadcast %cst_13 : f32 to vector<8x1xf32>
    %38 = arith.divf %36, %37 : vector<8x1xf32>
    %cst_14 = arith.constant 9.99999974E-6 : f32
    %39 = vector.broadcast %cst_14 : f32 to vector<8x1xf32>
    %40 = arith.addf %38, %39 : vector<8x1xf32>
    %41 = math.rsqrt %40 : vector<8x1xf32>
    %42 = vector.broadcast %41 : vector<8x1xf32> to vector<8x32xf32>
    %43 = arith.mulf %33, %42 : vector<8x32xf32>
    %c0_15 = arith.constant 0 : index
    %c0_16 = arith.constant 0 : index
    %44 = vector.load %arg7[%c0_15, %c0_16] : memref<1x32xf32, #tpu.memory_space<vmem>>, vector<1x32xf32>
    %45 = vector.broadcast %44 : vector<1x32xf32> to vector<8x32xf32>
    %46 = arith.mulf %43, %45 : vector<8x32xf32>
    %c0_17 = arith.constant 0 : index
    %c0_18 = arith.constant 0 : index
    %47 = vector.load %arg8[%c0_17, %c0_18] : memref<1x32xf32, #tpu.memory_space<vmem>>, vector<1x32xf32>
    %48 = vector.broadcast %47 : vector<1x32xf32> to vector<8x32xf32>
    %49 = arith.addf %46, %48 : vector<8x32xf32>
    %c0_19 = arith.constant 0 : index
    %c0_20 = arith.constant 0 : index
    %50 = vector.load %arg9[%c0_19, %c0_20] : memref<8x32xf32, #tpu.memory_space<vmem>>, vector<8x32xf32>
    tpu.vector_store %arg9[%c0_19, %c0_20], %49 {strides = array<i32>} : memref<8x32xf32, #tpu.memory_space<vmem>>, vector<8x32xf32>,
    return
  }
  func.func @transform_0(%arg0: i32, %arg1: i32) -> (i32, i32) {
    %c1_i32 = arith.constant 1 : i32
    %0 = arith.muli %arg0, %c1_i32 : i32
    %1 = arith.addi %0, %arg1 : i32
    %c0_i32 = arith.constant 0 : i32
    %c0_i32_0 = arith.constant 0 : i32
    return %1, %c0_i32 : i32, i32
  }
  func.func @transform_1(%arg0: i32, %arg1: i32) -> (i32, i32) {
    %c1_i32 = arith.constant 1 : i32
    %0 = arith.muli %arg0, %c1_i32 : i32
    %1 = arith.addi %0, %arg1 : i32
    %c0_i32 = arith.constant 0 : i32
    %c0_i32_0 = arith.constant 0 : i32
    return %1, %c0_i32 : i32, i32
  }
  func.func @transform_2(%arg0: i32, %arg1: i32) -> (i32, i32) {
    %c0_i32 = arith.constant 0 : i32
    %c0_i32_0 = arith.constant 0 : i32
    %c0_i32_1 = arith.constant 0 : i32
    return %c0_i32, %c0_i32_0 : i32, i32
  }
  func.func @transform_3(%arg0: i32, %arg1: i32) -> (i32, i32) {
    %c0_i32 = arith.constant 0 : i32
    %c0_i32_0 = arith.constant 0 : i32
    %c0_i32_1 = arith.constant 0 : i32
    return %c0_i32, %c0_i32_0 : i32, i32
  }
  func.func @transform_4(%arg0: i32, %arg1: i32) -> (i32, i32) {
    %c0_i32 = arith.constant 0 : i32
    %c0_i32_0 = arith.constant 0 : i32
    %c0_i32_1 = arith.constant 0 : i32
    return %c0_i32, %c0_i32_0 : i32, i32
  }
  func.func @transform_5(%arg0: i32, %arg1: i32) -> (i32, i32) {
    %c0_i32 = arith.constant 0 : i32
    %c0_i32_0 = arith.constant 0 : i32
    %c0_i32_1 = arith.constant 0 : i32
    return %c0_i32, %c0_i32_0 : i32, i32
  }
  func.func @transform_6(%arg0: i32, %arg1: i32) -> (i32, i32) {
    %c0_i32 = arith.constant 0 : i32
    %c0_i32_0 = arith.constant 0 : i32
    %c0_i32_1 = arith.constant 0 : i32
    return %c0_i32, %c0_i32_0 : i32, i32
  }
  func.func @transform_7(%arg0: i32, %arg1: i32) -> (i32, i32) {
    %c1_i32 = arith.constant 1 : i32
    %0 = arith.muli %arg0, %c1_i32 : i32
    %1 = arith.addi %0, %arg1 : i32
    %c0_i32 = arith.constant 0 : i32
    %c0_i32_0 = arith.constant 0 : i32
    return %1, %c0_i32 : i32, i32
  }
}

</mosaic_0001>

<bundles_post_ra>
// kernel: tpu_custom_call.1
= control target key start
LH: loop header
LB: loop body
LE: loop exit
PB: predicated region body
PF: predicated region fallthrough
CT: control target
= control target key end

     0   :  { %12 = vsyncpa [#allocation3], 0  ;;  %s1687_s0 = inlined_call_operand.vmem [shape: s32[16,1], index: 0, kind: input, shape index: {}]   ;;  %s1688_s1 = inlined_call_operand.vmem [shape: s32[16,1], index: 1, kind: input, shape index: {}]   ;;  %s1689_s2 = inlined_call_operand.vmem [shape: f32[50,32], index: 2, kind: input, shape index: {}]   ;;  %s1690_s3 = inlined_call_operand.vmem [shape: f32[2,32], index: 3, kind: input, shape index: {}]   ;;  %s1691_s4 = inlined_call_operand.vmem [shape: f32[64,32], index: 4, kind: input, shape index: {}]   ;;  %s1692_s5 = inlined_call_operand.vmem [shape: f32[1,32], index: 5, kind: input, shape index: {}]   ;;  %s1693_s6 = inlined_call_operand.vmem [shape: f32[1,32], index: 6, kind: input, shape index: {}]   ;;  %s1694_s7 = inlined_call_operand.hbm [shape: f32[16,32], index: 7, kind: output, shape index: {}]  }
   0x1   :  { %14 = vsyncpa [#allocation3 + $0x1], 0  ;;  %s1441_s24 = smov 0   ;;  %s1443_s25 = smov 0  }
   0x2   :  { %s1445_s26 = smov 0   ;;  %s1447_s27 = smov 0  }
   0x3   :  { %s1449_s28 = smov 0   ;;  %s1451_s29 = smov 0  }
   0x4 LB: > { %s1020_s30 = sadd.s32 4294967295, %s1394_s29   ;;  %s1021_s8 = sadd.s32 4294967294, %s1394_s29   ;;  %s1394_s29 = sphi %s1451_s29, %s20_s29   ;;  %s1390_s28 = sphi %s1449_s28, %s1701_s28   ;;  %s1386_s27 = sphi %s1447_s27, %s1700_s27   ;;  %s1382_s26 = sphi %s1445_s26, %s1699_s26   ;;  %s1378_s25 = sphi %s1443_s25, %s1698_s25   ;;  %s1374_s24 = sphi %s1441_s24, %s1697_s24  }
   0x5   : > { %s32_s9 = sadd.s32 1, %s1390_s28  ;;  %s202_s10 = sadd.s32 1, %s1382_s26 }
   0x6   : > { %p34_p0 = scmp.ge.s32.totalorder %s32_s9, 2  ;;  %p212_p1 = scmp.ne.s32.totalorder %s1382_s26, %s1378_s25 }
   0x7   : > { %p213_p2 = scmp.eq.s32.totalorder %s1020_s30, 1  ;;  %p218_p3 = scmp.ne.s32.totalorder %s1378_s25, %s1374_s24 }
   0x8   : > { %s1703_s9 = smov (%p34_p0, %s32_s9), 0  ;;  %p219_p5 = scmp.eq.s32.totalorder %s1021_s8, 1 }
   0x9   : > { %p1481_p4 = por %p213_p2, %p212_p1  ;;  %s199_s12 = ssub.s32 %s1390_s28, %s1703_s9 }
   0xa   : > { %p1024_p6 = scmp.ge.s32.totalorder %s1394_s29, 1  ;;  %p200_p7 = scmp.eq.s32.totalorder %s199_s12, 0 }
   0xb   : > { %p1488_p8 = por %p219_p5, %p218_p3  ;;  %p270_p9 = scmp.lt.s32.totalorder %s1394_s29, 3 }
   0xc   : > { %s1494_s14 = scalar_select %p200_p7, %s1382_s26, %s202_s10  }
   0xd   : > { %p271_p10 = pnand %p1024_p6, %p270_p9 }
   0xe   : > { %p308_p11 = scmp.lt.s32.totalorder (!%p271_p10), %s1386_s27, 1  ;;  %v330_v0 = vld [vmem:[%s1689_s2] sm:$0xff] (!%p271_p10)  ;;  %v331_v1 = vld [vmem:[%s1689_s2 + $0x8] sm:$0xff] (!%p271_p10)  ;;  %v332_v2 = vld [vmem:[%s1689_s2 + $0x10] sm:$0xff] (!%p271_p10)  ;;  %v1396_v3 = vmov (!%p271_p10), 0   ;;  %v1397_v4 = vmov (!%p271_p10), 0.0|0.0   ;;  %v322_v57 = vlaneseq (!%p271_p10) }
   0xf   : > { %274 = sbr.rel (%p271_p10) target bundleno = 742 (0x2e6), region = 48  ;;  %1313 = vset.pattern.permute.xlu0 (!%p271_p10), %v1396_v3  ;;  %1217 = vmatprep.subr.bf16.mxu0 (!%p271_p10), %v1397_v4  ;;  %v366_v5 = vand.u32 (!%p271_p10), 4294901760, %v330_v0  ;;  %v369_v6 = vand.u32 (!%p271_p10), 4294901760, %v331_v1  ;;  %v333_v7 = vld [vmem:[%s1689_s2 + $0x18] sm:$0xff] (!%p271_p10)  ;;  %v372_v8 = vand.u32 (!%p271_p10), 4294901760, %v332_v2  ;;  %v334_v14 = vld [vmem:[%s1689_s2 + $0x20] sm:$0xff] (!%p271_p10) }
  0x10   : > { %1190 = vmatprep.subr.bf16.mxu1 (!%p271_p10), %v1397_v4  ;;  %v375_v9 = vand.u32 (!%p271_p10), 4294901760, %v333_v7  ;;  %v335_v15 = vld [vmem:[%s1689_s2 + $0x28] sm:$0xff] (!%p271_p10)  ;;  %v378_v18 = vand.u32 (!%p271_p10), 4294901760, %v334_v14  ;;  %v336_v23 = vld [vmem:[%s1689_s2 + $0x30] sm:$0x3] (!%p271_p10)  ;;  %vm361_vm1 = vcmask (!%p271_p10), 1041408  }
  0x11   : > { %v1512_v10 = vpack.c.bf16 (!%p271_p10), %v369_v6, %v366_v5  ;;  %v1514_v11 = vsub.f32 (!%p271_p10), %v330_v0, %v366_v5  ;;  %v1516_v12 = vsub.f32 (!%p271_p10), %v331_v1, %v369_v6  ;;  %v1518_v13 = vsub.f32 (!%p271_p10), %v332_v2, %v372_v8  ;;  %s304_s17 = sand.u32 (!%p271_p10), 1, %s1378_s25  }
  0x12   : > { %v1526_v16 = vsub.f32 (!%p271_p10), %v333_v7, %v375_v9  ;;  %v1536_v17 = vpack.c.bf16 (!%p271_p10), %v375_v9, %v372_v8  ;;  %v381_v19 = vand.u32 (!%p271_p10), 4294901760, %v335_v15  ;;  %v1548_v25 = vsub.f32 (!%p271_p10), %v334_v14, %v378_v18  ;;  %s924_s16 = scalar_lea.sflag (!%p271_p10), [#allocation3], %s304_s17 }
  0x13   : > { %1219 = vmatpush3.bf16.msra.mxu0 (!%p271_p10), %v1512_v10  ;;  %1192 = vmatpush3.bf16.msra.mxu1 (!%p271_p10), %v1512_v10  ;;  %v363_v27 = vsel (!%p271_p10), %vm361_vm1, %v336_v23, 0  ;;  %v450_v28 = vand.u32 (!%p271_p10), 4294901760, %v1514_v11  ;;  %v457_v29 = vand.u32 (!%p271_p10), 4294901760, %v1516_v12  ;;  %vm1398_vm2 = vmmov (!%p271_p10), 0  }
  0x14   : > { %1220 = vmatprep.subr.bf16.mxu0 (!%p271_p10), %v1397_v4  ;;  %1193 = vmatprep.subr.bf16.mxu1 (!%p271_p10), %v1397_v4  ;;  %v1545_v24 = vpack.c.bf16 (!%p271_p10), %v381_v19, %v378_v18  ;;  %v1550_v26 = vsub.f32 (!%p271_p10), %v335_v15, %v381_v19  ;;  %v1399_v30 = vmov (!%p271_p10), 0.0   ;;  %v1561_v31 = vand.u32 (!%p271_p10), 4294901760, %v363_v27 }
  0x15   : > { %1153 = vmatprep.mubr.msk.f32.mxu0 (!%p271_p10), %vm1398_vm2, %v1399_v30  ;;  %1102 = vmatprep.mubr.msk.f32.mxu1 (!%p271_p10), %vm1398_vm2, %v1399_v30  ;;  %v1227_v32 = vpack.c.bf16 (!%p271_p10), %v457_v29, %v450_v28  ;;  %v451_v33 = vsub.f32 (!%p271_p10), %v1514_v11, %v450_v28  ;;  %v458_v34 = vsub.f32 (!%p271_p10), %v1516_v12, %v457_v29  ;;  %v464_v37 = vand.u32 (!%p271_p10), 4294901760, %v1518_v13  ;;  %v1034_v29 = vld [vmem:[%s1692_s5] ss:$0 sm:$0xff] (!%p271_p10) }
  0x16   : > { %s309_s23 = scalar_select %p308_p11, %s1386_s27, 1  ;;  %v471_v38 = vand.u32 4294901760, %v1526_v16  ;;  %v478_v44 = vand.u32 4294901760, %v1548_v25  ;;  %v485_v45 = vand.u32 4294901760, %v1550_v26  ;;  %v1209_v54 = vpack.c.bf16 %v1516_v12, %v1514_v11 }
  0x17   : > { %1222 = vmatpush3.bf16.msra.mxu0 %v1536_v17  ;;  %1195 = vmatpush3.bf16.msra.mxu1 %v1536_v17  ;;  %v452_v35 = vand.u32 4294901760, %v451_v33  ;;  %v459_v36 = vand.u32 4294901760, %v458_v34  ;;  %v465_v41 = vsub.f32 %v1518_v13, %v464_v37  ;;  %v1212_v55 = vpack.c.bf16 %v1526_v16, %v1518_v13 }
  0x18   : > { %s1026_s15 = sshll.u32 %s309_s23, 3  ;;  %1223 = vmatprep.subr.bf16.mxu0 %v1397_v4  ;;  %1196 = vmatprep.subr.bf16.mxu1 %v1397_v4  ;;  %v1230_v40 = vpack.c.bf16 %v471_v38, %v464_v37  ;;  %v472_v42 = vsub.f32 %v1526_v16, %v471_v38  ;;  %v1233_v47 = vpack.c.bf16 %v485_v45, %v478_v44  ;;  %v323_v58 = vand.u32 127, %v322_v57  ;;  %v339_v16 = vld [vmem:[%s1691_s4] sm:$0xff]  ;;  %s1037_s23 = sshll.u32 %s1386_s27, 7 }
  0x19   : > { %s317_s18 = scalar_lea.vmem %s1688_s1, %s1026_s15  ;;  %s311_s21 = scalar_lea.vmem %s1687_s0, %s1026_s15  ;;  %v1200_v39 = vpack.c.bf16 %v459_v36, %v452_v35  ;;  %v466_v43 = vand.u32 4294901760, %v465_v41  ;;  %v479_v48 = vsub.f32 %v1548_v25, %v478_v44  ;;  %v486_v49 = vsub.f32 %v1550_v26, %v485_v45 }
  0x1a   : > { %v321_v20 = vld [vmem:[%s317_s18] sm:$0xff]  ;;  %v473_v46 = vand.u32 4294901760, %v472_v42  ;;  %v1215_v56 = vpack.c.bf16 %v1550_v26, %v1548_v25  ;;  %vm357_vm3 = vcmask 408576   ;;  %v491_v1 = vsub.f32 %v363_v27, %v1561_v31  ;;  %s1025_s18 = sshll.u32 %s304_s17, 3  ;;  %s1639_s15 = scalar_lea.hbm %s1694_s7, %s1037_s23 }
  0x1b   : > { %v320_v21 = vld [vmem:[%s311_s21] sm:$0xff]  ;;  %vm350_vm0 = vcmp.eq.s32.totalorder %v321_v20, 1  ;;  %1225 = vmatpush3.bf16.msra.mxu0 %v1545_v24  ;;  %1198 = vmatpush3.bf16.msra.mxu1 %v1545_v24  ;;  %v480_v51 = vand.u32 4294901760, %v479_v48  ;;  %v487_v52 = vand.u32 4294901760, %v486_v49  ;;  %vm891_vm6 = vcmask 261120   ;;  %s306_s30 = scalar_lea.vmem [#allocation2], %s1025_s18 }
  0x1c   : > { %325 = vperm.xlu0 %1313, %v320_v21   ;;  %v351_v22 = vsel %vm350_vm0, 1, %v1396_v3  ;;  %1151 = vmatprep.subr.mxu0 %v1399_v30  ;;  %v1203_v50 = vpack.c.bf16 %v473_v46, %v466_v43  ;;  %v492_v3 = vand.u32 4294901760, %v491_v1  ;;  %s938_s8 = sshll.u32 %s306_s30, 4  ;;  %s1400_s27 = smov [#allocation2]   ;;  %s1641_s8 = int_to_ptr.vmem [resolvable:$true] %s938_s8 }
  0x1d   : > { %1100 = vmatprep.subr.mxu1 %v1399_v30  ;;  %v1206_v53 = vpack.c.bf16 %v487_v52, %v480_v51  ;;  %s1316_s19 = scalar_lea.vmem %s1641_s8, 128  ;;  %s1320_s18 = sshll.u32 %s1400_s27, 4  ;;  %s1321_s18 = int_to_ptr.vmem [resolvable:$false] %s1320_s18 }
  0x1e   : > { %v493_v5 = vsub.f32 %v491_v1, %v492_v3  ;;  %p1317_p12 = scmp.ne.s32.totalorder %s1641_s8, %s1316_s19  ;;  %s1322_s20 = scalar_lea.vmem %s1321_s18, 256 }
  0x1f   : > { %1152 = vmatpush3.msra.mxu0 %v1561_v31  ;;  %1101 = vmatpush3.msra.mxu1 %v1561_v31  ;;  %p1323_p1 = scmp.lt.s32.totalorder %s1641_s8, %s1321_s18  ;;  %p1324_p2 = scmp.lt.s32.totalorder %s1322_s20, %s1316_s19 }
  0x20   : > { %353 = vperm.xlu0 %1313, %v351_v22   ;;  %1226 = vmatprep.subr.bf16.mxu0 %v1397_v4  ;;  %v494_v6 = vand.u32 4294901760, %v493_v5  ;;  %p1318_p13 = pnand %p1317_p12, %p1481_p4 }
  0x21   : > { %1199 = vmatprep.subr.bf16.mxu1 %v1397_v4  ;;  %p1325_p3 = por %p1324_p2, %p1323_p1 }
  0x22   : > { %p1319_p0 = pneg %p1318_p13 }
  0x24   : > { %p1326_p5 = pnand %p1325_p3, %p1319_p0 }
  0x9b   : > { %v326_v59 = vpop.permute.xlu0 %325 }
  0x9c   : > { %vm327_vm4 = vcmp.eq.s32.totalorder %v326_v59, %v323_v58 }
  0x9d   : > { %v1028_v60 = vsel %vm327_vm4, 1.0, %v1399_v30 }
  0x9e   : > { %v359_v61 = vsel %vm357_vm3, %v1028_v60, 0 }
  0x9f   : > { %v438_v62 = vsub.f32 %v359_v61, %v359_v61  ;;  %v354_v7 = vpop.permute.xlu0 %353 }
  0xa0   : > { %vm355_vm5 = vcmp.eq.s32.totalorder %v354_v7, 1 }
  0xa1   : > { %v439_v63 = vand.u32 4294901760, %v438_v62 }
  0xa3   : > { %1154 = vmatmul.mubr.f32.vlgmr.msra.gmra.mrb[0].mxu0 %v439_v63  ;;  %v440_v0 = vsub.f32 %v438_v62, %v439_v63 }
  0xa4   : > { %1228 = vmatpush3.bf16.msra.mxu0 %v1227_v32  ;;  %1170 = vmatprep.mubr.msk.f32.mxu0 %vm1398_vm2, %v1399_v30 }
  0xa5   : > { %1229 = vmatprep.subr.bf16.mxu0 %v1397_v4  ;;  %v441_v2 = vand.u32 4294901760, %v440_v0 }
  0xa7   : > { %1103 = vmatmul.mubr.f32.vlgmr.msra.gmra.mrb[0].mxu1 %v441_v2 }
  0xa8   : > { %1201 = vmatpush3.bf16.msra.mxu1 %v1200_v39  ;;  %1231 = vmatpush3.bf16.msra.mxu0 %v1230_v40 }
  0xa9   : > { %1202 = vmatprep.subr.bf16.mxu1 %v1397_v4  ;;  %1232 = vmatprep.subr.bf16.mxu0 %v1397_v4 }
  0xaa   : > { %1119 = vmatprep.mubr.msk.f32.mxu1 %vm1398_vm2, %v1399_v30 }
  0xac   : > { %1204 = vmatpush3.bf16.msra.mxu1 %v1203_v50  ;;  %1234 = vmatpush3.bf16.msra.mxu0 %v1233_v47 }
  0xad   : > { %1205 = vmatprep.subr.bf16.mxu1 %v1397_v4  ;;  %1168 = vmatprep.subr.mxu0 %v1399_v30 }
  0xb0   : > { %1207 = vmatpush3.bf16.msra.mxu1 %v1206_v53  ;;  %1169 = vmatpush3.msra.mxu0 %v492_v3 }
  0xb1   : > { %1171 = vmatmul.mubr.msk.f32.vlgmr.msra.gmra.mrb[0].mxu0 %vm357_vm3, %v1028_v60  ;;  %1235 = vmatprep.subr.bf16.mxu0 %v1397_v4 }
  0xb2   : > { %1237 = vmatpush3.bf16.msra.mxu0 %v1512_v10  ;;  %1117 = vmatprep.subr.mxu1 %v1399_v30  ;;  %v1029_v10 = vld [vmem:[%s1690_s3] ss:$0 sm:$0xff] }
  0xb3   : > { %1238 = vmatprep.subr.bf16.mxu0 %v1397_v4  ;;  %1187 = vmatprep.mubr.msk.f32.mxu0 %vm1398_vm2, %v1399_v30 }
  0xb4   : > { %1118 = vmatpush3.msra.mxu1 %v494_v6 }
  0xb5   : > { %1120 = vmatmul.mubr.msk.f32.vlgmr.msra.gmra.mrb[0].mxu1 %vm357_vm3, %v1028_v60  ;;  %1208 = vmatprep.subr.bf16.mxu1 %v1397_v4 }
  0xb6   : > { %1210 = vmatpush3.bf16.msra.mxu1 %v1209_v54  ;;  %1240 = vmatpush3.bf16.msra.mxu0 %v1536_v17 }
  0xb7   : > { %1211 = vmatprep.subr.bf16.mxu1 %v1397_v4  ;;  %1241 = vmatprep.subr.bf16.mxu0 %v1397_v4 }
  0xb8   : > { %1136 = vmatprep.mubr.msk.f32.mxu1 %vm1398_vm2, %v1399_v30 }
  0xba   : > { %1213 = vmatpush3.bf16.msra.mxu1 %v1212_v55  ;;  %1243 = vmatpush3.bf16.msra.mxu0 %v1545_v24 }
  0xbb   : > { %1214 = vmatprep.subr.bf16.mxu1 %v1397_v4  ;;  %1185 = vmatprep.subr.mxu0 %v1399_v30  ;;  %v1030_v4 = vld [vmem:[%s1690_s3 + $0x1] ss:$0 sm:$0xff] }
  0xbc   : > { %v356_v11 = vsel %vm355_vm5, %v1030_v4, %v1029_v10 }
  0xbe   : > { %1216 = vmatpush3.bf16.msra.mxu1 %v1215_v56  ;;  %1186 = vmatpush3.msra.mxu0 %v1561_v31  ;;  %v1035_v31 = vld [vmem:[%s1693_s6] ss:$0 sm:$0xff] }
  0xbf   : > { %1188 = vmatmul.mubr.msk.f32.vlgmr.msra.gmra.mrb[0].mxu0 %vm357_vm3, %v1028_v60  ;;  %1134 = vmatprep.subr.mxu1 %v1399_v30 }
  0xc2   : > { %1135 = vmatpush3.msra.mxu1 %v491_v1 }
  0xc3   : > { %1137 = vmatmul.mubr.f32.vlgmr.msra.gmra.mrb[0].mxu1 %v438_v62 }
 0x192   : > { %v885_v8 = vpop.f32.mrb[0].mxu0 }
 0x193   : > { %v1189_v9 = vpop.f32.mrb[1].mxu0 }
 0x196   : > { %v635_v12 = vpop.f32.mrb[0].mxu1 }
 0x197   : > { %v1244_v13 = vadd.f32 %v635_v12, %v356_v11  ;;  %v1138_v14 = vpop.f32.mrb[1].mxu1 }
 0x199   : > { %v1245_v15 = vadd.f32 %v1244_v13, %v885_v8 }
 0x19b   : > { %v889_v17 = vmul.f32 5.656854, %v1245_v15 }
 0x19d   : > { %v890_v18 = vadd.f32 %v889_v17, %v339_v16 }
 0x19f   : > { %v892_v19 = vsel %vm891_vm6, %v890_v18, 0.0 }
 0x1a0   : > { %893 = vadd.xlane.f32.xlu1 %v892_v19 }
 0x22d   : > { %v894_v20 = vpop.xlane.xlu1 %893 }
 0x22e   : > { %v896_v21 = vmul.f32 0.03125, %v894_v20 }
 0x230   : > { %v897_v22 = vsub.f32 %v890_v18, %v896_v21 }
 0x232   : > { %v898_v23 = vmul.f32 %v897_v22, %v897_v22 }
 0x234   : > { %v899_v24 = vsel %vm891_vm6, %v898_v23, 0.0 }
 0x235   : > { %900 = vadd.xlane.f32.xlu1 %v899_v24 }
 0x2c2   : > { %v901_v25 = vpop.xlane.xlu1 %900 }
 0x2c3   : > { %v902_v26 = vmul.f32 0.03125, %v901_v25 }
 0x2c5   : > { %v903_v27 = vadd.f32 1e-05, %v902_v26 }
 0x2c7   : > { %1314 = vrsqrt.f32 %v903_v27 }
 0x2d1   : > { %v1315_v28 = vpop.eup %1314 }
 0x2d2   : > { %v905_v30 = vmul.f32 %v1315_v28, %v897_v22 }
 0x2d4   : > { %v913_v32 = vmul.f32 %v1034_v29, %v905_v30 }
 0x2d6   : > { %v921_v33 = vadd.f32 %v1035_v31, %v913_v32 }
 0x2d8   : > { %922 = vst.msk [vmem:[%s306_s30] sm:$0xff] %vm891_vm6, %v921_v33 }
 0x2d9   : > { %1329 = shalt.err (!%p1326_p5)
}
 0x2da   : > { %s1330_s17 = scalar_lea.hbm %s1639_s15, 128  ;;  %s1334_s23 = scalar_lea.hbm %s1694_s7, 256 }
 0x2db   : > { %p1331_p6 = scmp.ne.s32.totalorder %s1639_s15, %s1330_s17  ;;  %p1335_p10 = scmp.lt.u32.totalorder %s1639_s15, %s1694_s7 }
 0x2dc   : > { %p1336_p11 = scmp.lt.u32.totalorder %s1334_s23, %s1330_s17  ;;  %p1338_p13 = scmp.lt.u32.totalorder %s1330_s17, %s1639_s15 }
 0x2dd   : > { %p1332_p7 = pnand %p1331_p6, %p1481_p4 }
 0x2de   : > { %p1337_p12 = por %p1336_p11, %p1335_p10 }
 0x2df   : > { %p1333_p9 = pneg %p1332_p7 }
 0x2e0   : > { %p1339_p0 = por %p1338_p13, %p1337_p12 }
 0x2e2   : > { %p1340_p1 = pnand %p1339_p0, %p1333_p9 }
 0x2e4   : > { %1343 = shalt.err (!%p1340_p1)
}
 0x2e5   : > { %1254 = dma.vmem_to_hbm [thread:$0]  (%p1481_p4), %s1641_s8, 128, %s1639_s15, %s924_s16  }
 0x2e6 PF: > { %p1260_p2 = scmp.ge.s32.totalorder %s1394_s29, 2  ;;  %s950_s12 = sand.u32 1, %s1374_s24  }
 0x2e7   : > { %s951_s19 = scalar_lea.sflag [#allocation3], %s950_s12 }
 0x2e8   : > { %p1257_p3 = pnand %p1260_p2, %p1488_p8 }
 0x2ea   : > { %1369 = dma.done.wait (!%p1257_p3), %s951_s19, 128  }
 0x2eb   : > { %1371 = vsyncadd (!%p1257_p3), %s951_s19, 4294967168  ;;  %s20_s29 = sadd.s32 1, %s1394_s29   ;;  %s1697_s24 = smov %s1378_s25 }
 0x2ec   : > { %p17_p5 = scmp.ge.s32.totalorder %s20_s29, 4   ;;  %s1698_s25 = smov %s1382_s26 }
 0x2ed   : > { %s1699_s26 = smov %s1494_s14  ;;  %s1700_s27 = smov %s1390_s28 }
 0x2ee   : > { %s1701_s28 = smov %s1703_s9  ;;  %19 = sbr.rel (!%p17_p5) target bundleno = 4 (0x4), region = 87 }
 0x2f5   :  { %956 = vsyncpa [#allocation3], 1 }
 0x2f6   :  { %958 = vsyncpa [#allocation3 + $0x1], 1 }

</bundles_post_ra>
